<compile_context>
chip_gen: v5e
topology: v5e:2x2
jax: 0.10.0
libtpu: 0.0.40
codegen_flags: <defaults>
</compile_context>

<pallas_src>
import jax
import jax.numpy as jnp
from jax.experimental import pallas as pl
from jax.experimental.pallas import tpu as pltpu

LANE = 128


# --------------------------------------------------------------------------- #
# Kernel body
# --------------------------------------------------------------------------- #
def _mish_kernel(x_ref, o_ref):
    x = x_ref[...].astype(jnp.float32)
    # mish(x) = x * tanh(softplus(x)) = x * (e^{2x} + 2 e^x) / (e^{2x} + 2 e^x + 2)
    # Overflow-safe rational form in u = exp(-|x|) in (0, 1]:
    #   x >= 0:  num = 1 + 2u        den = 1 + 2u + 2u^2
    #   x <  0:  num = u^2 + 2u      den = u^2 + 2u + 2
    u = jnp.exp(-jnp.abs(x))
    u2 = u * u
    pos = x >= 0.0
    num = jnp.where(pos, 1.0 + 2.0 * u, u2 + 2.0 * u)
    den = jnp.where(pos, 1.0 + 2.0 * u + 2.0 * u2, u2 + 2.0 * u + 2.0)
    o_ref[...] = (x * num / den).astype(o_ref.dtype)


# --------------------------------------------------------------------------- #
# Chip-aware tiling
# --------------------------------------------------------------------------- #
def _chip_config():
    """Trace-time chip lookup -> (tensorcores_per_chip, f32 block bytes, vmem limit)."""
    kind = ""
    try:
        kind = jax.devices()[0].device_kind.lower()
    except Exception:
        pass
    if "v7" in kind:
        # v7x: 2 TCs/chip share the "parallel" grid axis; ~3.2 TB/s per-TC HBM
        # makes a 2 MiB step only ~1.3 us against ~0.35 us fixed per-step
        # overhead, so use ~6 MiB blocks.  4 double-buffered 6 MiB buffers +
        # f32 temps need > the 32 MiB default scoped limit -> 48 MiB (< 64 MiB
        # physical per TC).
        return 2, 6 << 20, 48 << 20
    # v5e / v6e: single TensorCore, 2 MiB f32-equivalent blocks are already on
    # the ~85% HBM-roofline plateau.  32 MiB scoped VMEM (physical is 128 MiB)
    # covers 4 I/O buffers + in-kernel f32 temporaries even for bf16 inputs.
    return 1, 2 << 20, 32 << 20


def _round_up(a, m):
    return ((a + m - 1) // m) * m


def _tile_rows(rows, sub, num_tc, block_f32_bytes):
    """Rows per block: sized by the f32 working set, balanced across TCs."""
    # f32 compute-working-set sized tile (intermediates are f32 regardless of
    # the storage dtype), rounded down to the sublane tile.
    tr = max(sub, (block_f32_bytes // (LANE * 4)) // sub * sub)

    if tr >= rows:
        if num_tc >= 2 and rows >= 2 * sub:
            # Even a single-block-sized problem gets split so both v7x
            # TensorCores (and both halves of HBM bandwidth) have work.
            tr = _round_up(pl.cdiv(rows, num_tc), sub)
        else:
            # Single-TC chip (or tiny input): one full-array block; extra grid
            # steps would only add fixed per-step overhead.
            return rows

    nb = pl.cdiv(rows, tr)
    if num_tc >= 2 and nb > 1:
        # Keep the block count a multiple of the TC count so the "parallel"
        # grid axis splits evenly (avoid a 2-vs-1 imbalance on v7x).
        nb = _round_up(nb, num_tc)
        tr = _round_up(pl.cdiv(rows, nb), sub)
    return min(tr, rows)


# --------------------------------------------------------------------------- #
# Wrapper
# --------------------------------------------------------------------------- #
def _mish_jnp(x):
    """Plain-jnp mish (reference / tiny-tensor / ragged-tail path)."""
    xf = x.astype(jnp.float32)
    return (xf * jnp.tanh(jax.nn.softplus(xf))).astype(x.dtype)


def mish(x, *, donate=False, block_f32_bytes=None):
    """Elementwise mish(x) for any-shaped floating input (e.g. NCHW activations)."""
    orig_shape = x.shape
    dtype = x.dtype
    n = x.size
    if n == 0:
        return x

    x_flat = x.reshape(-1)
    rows = n // LANE
    tail = n - rows * LANE

    if rows == 0:
        # Fewer than 128 elements: a kernel launch is pure overhead.
        return _mish_jnp(x_flat).reshape(orig_shape)

    num_tc, chip_block_bytes, vmem_limit = _chip_config()
    if block_f32_bytes is None:
        block_f32_bytes = chip_block_bytes

    itemsize = jnp.dtype(dtype).itemsize
    sub = max(8, 32 // itemsize)          # native sublane tile: 8 f32 / 16 bf16
    tr = _tile_rows(rows, sub, num_tc, block_f32_bytes)

    # 128-aligned prefix, reshaped (no full-array pad) to a lane-dense slab in
    # the native dtype.  Pallas masks the partial edge block of the grid.
    x_main = (x_flat if tail == 0 else x_flat[: rows * LANE]).reshape(rows, LANE)

    out2d = pl.pallas_call(
        _mish_kernel,
        out_shape=jax.ShapeDtypeStruct((rows, LANE), dtype),
        grid=(pl.cdiv(rows, tr),),
        in_specs=[pl.BlockSpec((tr, LANE), lambda i: (i, 0))],
        out_specs=pl.BlockSpec((tr, LANE), lambda i: (i, 0)),
        compiler_params=pltpu.CompilerParams(
            dimension_semantics=("parallel",),   # shards the grid over v7x's 2 TCs
            vmem_limit_bytes=vmem_limit),
        input_output_aliases=({0: 0} if donate else {}),
    )(x_main)

    out_flat = out2d.reshape(-1)
    if tail:
        # <128-element tail: plain jnp (negligible work, no full-array copies).
        out_flat = jnp.concatenate([out_flat, _mish_jnp(x_flat[rows * LANE:])])
    return out_flat.reshape(orig_shape)


# --------------------------------------------------------------------------- #
# Self-test
# --------------------------------------------------------------------------- #
if __name__ == "__main__":
    key = jax.random.PRNGKey(0)
    k0, k1, k2, k3, k4 = jax.random.split(key, 5)

    # NCHW activation, f32 (typical use right after a conv).
    x = jax.random.normal(k0, (2, 4, 16, 16), dtype=jnp.float32)
    y = jax.block_until_ready(mish(x))
    assert y.shape == x.shape and y.dtype == x.dtype
    assert jnp.allclose(y, _mish_jnp(x), atol=1e-5, rtol=1e-5)

    # bf16 stays bf16 through the BlockSpec (half the HBM traffic), f32 math inside.
    x_bf = jax.random.normal(k1, (2, 4, 16, 16), dtype=jnp.bfloat16)
    y_bf = jax.block_until_ready(mish(x_bf))
    assert y_bf.dtype == jnp.bfloat16
    assert jnp.allclose(y_bf.astype(jnp.float32),
                        _mish_jnp(x_bf).astype(jnp.float32), atol=2e-2, rtol=2e-2)

    # Ragged size (not a multiple of 128): aligned-prefix kernel + jnp tail
    # (no full-array jnp.pad / trailing-slice copies).
    x_rag = 4.0 * jax.random.normal(k2, (5, 7, 13), dtype=jnp.float32)
    y_rag = jax.block_until_ready(mish(x_rag))
    assert jnp.allclose(y_rag, _mish_jnp(x_rag), atol=1e-5, rtol=1e-5)

    # Tiny (<128 elements): pure-jnp fallback, no kernel launch.
    x_tiny = jax.random.normal(k3, (3, 5, 7), dtype=jnp.float32)
    y_tiny = jax.block_until_ready(mish(x_tiny))
    assert jnp.allclose(y_tiny, _mish_jnp(x_tiny), atol=1e-5, rtol=1e-5)

    # Multi-block grid path (small block override so the 2-step pipeline runs).
    x_mb = jax.random.normal(k4, (2, 4, 64, 64), dtype=jnp.float32)       # rows=256
    y_mb = jax.block_until_ready(mish(x_mb, block_f32_bytes=64 << 10))    # tr=128 -> grid=(2,)
    assert jnp.allclose(y_mb, _mish_jnp(x_mb), atol=1e-5, rtol=1e-5)

    # Donated-input variant (halves HBM footprint for large activations).
    x_d = jax.random.normal(k0, (2, 4, 16, 16), dtype=jnp.float32)
    ref_d = _mish_jnp(x_d)           # compute reference BEFORE donating the buffer
    y_d = jax.block_until_ready(mish(x_d, donate=True))
    assert jnp.allclose(y_d, ref_d, atol=1e-5, rtol=1e-5)

    print("KERNEL_OK")
</pallas_src>

<mosaic_0001>
module attributes {stable_mosaic.version = 11 : i64} {
  func.func @_mish_kernel(%arg0: i32, %arg1: memref<16x128xf32, #tpu.memory_space<vmem>>, %arg2: memref<16x128xf32, #tpu.memory_space<vmem>>) attributes {dimension_semantics = [#tpu.dimension_semantics<parallel>], iteration_bounds = array<i64: 1>, scalar_prefetch = 0 : i64, scratch_operands = 0 : i64, tpu.core_type = #tpu.core_type<tc>, window_params = [{transform_indices = @transform_0, window_bounds = array<i64: 16, 128>}, {transform_indices = @transform_1, window_bounds = array<i64: 16, 128>}]} {
    %c0 = arith.constant 0 : index
    %c0_0 = arith.constant 0 : index
    %0 = vector.load %arg1[%c0, %c0_0] : memref<16x128xf32, #tpu.memory_space<vmem>>, vector<16x128xf32>
    %1 = math.absf %0 : vector<16x128xf32>
    %cst = arith.constant 0.000000e+00 : f32
    %2 = vector.broadcast %cst : f32 to vector<16x128xf32>
    %3 = arith.subf %2, %1 : vector<16x128xf32>
    %4 = math.exp %3 : vector<16x128xf32>
    %5 = arith.mulf %4, %4 : vector<16x128xf32>
    %cst_1 = arith.constant 0.000000e+00 : f32
    %6 = vector.broadcast %cst_1 : f32 to vector<16x128xf32>
    %7 = arith.cmpf oge, %0, %6 : vector<16x128xf32>
    %cst_2 = arith.constant 2.000000e+00 : f32
    %8 = vector.broadcast %cst_2 : f32 to vector<16x128xf32>
    %9 = arith.mulf %8, %4 : vector<16x128xf32>
    %cst_3 = arith.constant 1.000000e+00 : f32
    %10 = vector.broadcast %cst_3 : f32 to vector<16x128xf32>
    %11 = arith.addf %10, %9 : vector<16x128xf32>
    %cst_4 = arith.constant 2.000000e+00 : f32
    %12 = vector.broadcast %cst_4 : f32 to vector<16x128xf32>
    %13 = arith.mulf %12, %4 : vector<16x128xf32>
    %14 = arith.addf %5, %13 : vector<16x128xf32>
    %15 = arith.select %7, %11, %14 : vector<16x128xi1>, vector<16x128xf32>
    %cst_5 = arith.constant 2.000000e+00 : f32
    %16 = vector.broadcast %cst_5 : f32 to vector<16x128xf32>
    %17 = arith.mulf %16, %4 : vector<16x128xf32>
    %cst_6 = arith.constant 1.000000e+00 : f32
    %18 = vector.broadcast %cst_6 : f32 to vector<16x128xf32>
    %19 = arith.addf %18, %17 : vector<16x128xf32>
    %cst_7 = arith.constant 2.000000e+00 : f32
    %20 = vector.broadcast %cst_7 : f32 to vector<16x128xf32>
    %21 = arith.mulf %20, %5 : vector<16x128xf32>
    %22 = arith.addf %19, %21 : vector<16x128xf32>
    %cst_8 = arith.constant 2.000000e+00 : f32
    %23 = vector.broadcast %cst_8 : f32 to vector<16x128xf32>
    %24 = arith.mulf %23, %4 : vector<16x128xf32>
    %25 = arith.addf %5, %24 : vector<16x128xf32>
    %cst_9 = arith.constant 2.000000e+00 : f32
    %26 = vector.broadcast %cst_9 : f32 to vector<16x128xf32>
    %27 = arith.addf %25, %26 : vector<16x128xf32>
    %28 = arith.select %7, %22, %27 : vector<16x128xi1>, vector<16x128xf32>
    %29 = arith.mulf %0, %15 : vector<16x128xf32>
    %30 = arith.divf %29, %28 : vector<16x128xf32>
    %c0_10 = arith.constant 0 : index
    %c0_11 = arith.constant 0 : index
    %31 = vector.load %arg2[%c0_10, %c0_11] : memref<16x128xf32, #tpu.memory_space<vmem>>, vector<16x128xf32>
    tpu.vector_store %arg2[%c0_10, %c0_11], %30 {strides = array<i32>} : memref<16x128xf32, #tpu.memory_space<vmem>>, vector<16x128xf32>,
    return
  }
  func.func @transform_0(%arg0: i32) -> (i32, i32) {
    %c0_i32 = arith.constant 0 : i32
    %c0_i32_0 = arith.constant 0 : i32
    return %arg0, %c0_i32 : i32, i32
  }
  func.func @transform_1(%arg0: i32) -> (i32, i32) {
    %c0_i32 = arith.constant 0 : i32
    %c0_i32_0 = arith.constant 0 : i32
    return %arg0, %c0_i32 : i32, i32
  }
}

</mosaic_0001>

<bundles_post_ra>
// kernel: tpu_custom_call.1
= control target key start
LH: loop header
LB: loop body
LE: loop exit
PB: predicated region body
PF: predicated region fallthrough
CT: control target
= control target key end

     0   :  { %6 = vsyncpa [#allocation3], 0  ;;  %s202_s0 = inlined_call_operand.hbm [shape: f32[16,128], index: 0, kind: input, shape index: {}]   ;;  %s203_s1 = inlined_call_operand.hbm [shape: f32[16,128], index: 1, kind: output, shape index: {}]  }
   0x1   :  { %7 = vsyncpa [#allocation4], 0  ;;  %s12_s8 = sshll.u32 %s202_s0, 4  ;;  %s172_s9 = smov [#allocation2]   ;;  %s13_s8 = int_to_ptr.hbm [resolvable:$true] %s12_s8 }
   0x2   :  { %s14_s10 = sshll.u32 %s172_s9, 4  ;;  %s173_s11 = smov 128   ;;  %s15_s10 = int_to_ptr.vmem [resolvable:$true] %s14_s10 }
   0x3   :  { %s174_s12 = smov 8  }
   0x4   :  { %20 = dma.hbm_to_vmem [thread:$0]  %s13_s8, 256, %s15_s10, [#allocation3], %s173_s11, %s173_s11, %s174_s12  }
   0x5   :  { %168 = dma.done.wait [#allocation3], 256  }
   0x6   :  { %169 = vsyncadd [#allocation3], 4294967040  ;;  %v25_v0 = vld [vmem:[#allocation2] sm:$0xff]  ;;  %v26_v1 = vld [vmem:[#allocation2 + $0x8] sm:$0xff]  ;;  %s175_s0 = smov [#allocation5]   ;;  %s95_s16 = sshll.u32 %s203_s1, 4  ;;  %s96_s16 = int_to_ptr.hbm [resolvable:$true] %s95_s16 }
   0x7   :  { %v27_v2 = vand.u32 2147483647, %v25_v0  ;;  %v28_v3 = vand.u32 2147483647, %v26_v1  ;;  %vm37_vm0 = vcmp.ge.f32.partialorder %v25_v0, 0.0  ;;  %vm38_vm1 = vcmp.ge.f32.partialorder %v26_v1, 0.0 }
   0x8   :  { %s93_s13 = sshll.u32 %s175_s0, 4  ;;  %s94_s13 = int_to_ptr.vmem [resolvable:$true] %s93_s13 }
   0x9   :  { %v29_v4 = vsub.f32 0.0, %v27_v2  ;;  %v30_v5 = vsub.f32 0.0, %v28_v3 }
   0xb   :  { %v31_v6 = vmul.f32 1.442695, %v29_v4  ;;  %v33_v7 = vmul.f32 1.442695, %v30_v5 }
   0xd   :  { %112 = vpow2.f32 %v31_v6 }
   0xe   :  { %114 = vpow2.f32 %v33_v7 }
  0x13   :  { %v113_v8 = vpop.eup %112 }
  0x14   :  { %v115_v9 = vpop.eup %114  ;;  %v35_v10 = vmul.f32 %v113_v8, %v113_v8  ;;  %v39_v11 = vmul.f32 2.0, %v113_v8 }
  0x15   :  { %v36_v12 = vmul.f32 %v115_v9, %v115_v9  ;;  %v40_v13 = vmul.f32 2.0, %v115_v9 }
  0x16   :  { %v41_v14 = vadd.f32 1.0, %v39_v11  ;;  %v43_v15 = vadd.f32 %v39_v11, %v35_v10  ;;  %v47_v16 = vmul.f32 2.0, %v35_v10 }
  0x17   :  { %v42_v17 = vadd.f32 1.0, %v40_v13  ;;  %v44_v18 = vadd.f32 %v40_v13, %v36_v12  ;;  %v48_v19 = vmul.f32 2.0, %v36_v12 }
  0x18   :  { %v49_v20 = vadd.f32 %v47_v16, %v41_v14  ;;  %v51_v21 = vadd.f32 2.0, %v43_v15  ;;  %v45_v33 = vsel %vm37_vm0, %v41_v14, %v43_v15 }
  0x19   :  { %v50_v22 = vadd.f32 %v48_v19, %v42_v17  ;;  %v52_v23 = vadd.f32 2.0, %v44_v18  ;;  %v46_v39 = vsel %vm38_vm1, %v42_v17, %v44_v18  ;;  %v55_v40 = vmul.f32 %v45_v33, %v25_v0 }
  0x1a   :  { %v53_v24 = vsel %vm37_vm0, %v49_v20, %v51_v21  ;;  %v56_v45 = vmul.f32 %v46_v39, %v26_v1 }
  0x1b   :  { %116 = vrcp.f32 %v53_v24  ;;  %v54_v25 = vsel %vm38_vm1, %v50_v22, %v52_v23  ;;  %vm62_vm2 = vweird.f32 %v53_v24  ;;  %v68_v29 = vand.u32 2147483648, %v53_v24 }
  0x1c   :  { %118 = vrcp.f32 %v54_v25  ;;  %v66_v31 = vand.u32 2147483647, %v53_v24  ;;  %vm77_vm4 = vweird.f32 %v54_v25  ;;  %v83_v34 = vand.u32 2147483648, %v54_v25 }
  0x1d   :  { %v81_v37 = vand.u32 2147483647, %v54_v25  ;;  %v69_v38 = vor.u32 1.1754944e-38, %v68_v29 }
  0x1e   :  { %vm67_vm7 = vcmp.eq.f32.partialorder %v66_v31, 8.507059e+37  ;;  %v84_v43 = vor.u32 1.1754944e-38, %v83_v34 }
  0x1f   :  { %vm82_vm9 = vcmp.eq.f32.partialorder %v81_v37, 8.507059e+37 }
  0x21   :  { %v117_v26 = vpop.eup %116 }
  0x22   :  { %v58_v27 = vmul.f32 %v117_v26, %v53_v24  ;;  %v119_v28 = vpop.eup %118  ;;  %vm63_vm3 = vweird.f32 %v117_v26 }
  0x23   :  { %v73_v32 = vmul.f32 %v119_v28, %v54_v25  ;;  %vm78_vm5 = vweird.f32 %v119_v28  ;;  %vm64_vm6 = vmor %vm62_vm2, %vm63_vm3 }
  0x24   :  { %v59_v30 = vsub.f32 1.0, %v58_v27  ;;  %vm79_vm8 = vmor %vm77_vm4, %vm78_vm5 }
  0x25   :  { %v74_v36 = vsub.f32 1.0, %v73_v32 }
  0x26   :  { %v60_v35 = vmul.f32 %v117_v26, %v59_v30 }
  0x27   :  { %v75_v42 = vmul.f32 %v119_v28, %v74_v36 }
  0x28   :  { %v61_v41 = vadd.f32 %v117_v26, %v60_v35 }
  0x29   :  { %v76_v46 = vadd.f32 %v119_v28, %v75_v42 }
  0x2a   :  { %v65_v44 = vsel %vm64_vm6, %v117_v26, %v61_v41 }
  0x2b   :  { %v70_v47 = vsel %vm67_vm7, %v69_v38, %v65_v44  ;;  %v80_v49 = vsel %vm79_vm8, %v119_v28, %v76_v46 }
  0x2c   :  { %v71_v48 = vmul.f32 %v70_v47, %v55_v40  ;;  %v85_v50 = vsel %vm82_vm9, %v84_v43, %v80_v49 }
  0x2d   :  { %v86_v51 = vmul.f32 %v85_v50, %v56_v45 }
  0x2e   :  { %87 = vst [vmem:[#allocation5] sm:$0xff] %v71_v48 }
  0x2f   :  { %88 = vst [vmem:[#allocation5 + $0x8] sm:$0xff] %v86_v51 }
  0x30   :  { %101 = dma.vmem_to_hbm [thread:$0]  %s94_s13, 256, %s96_s16, [#allocation4], %s173_s11, %s173_s11, %s174_s12  }
  0x31   :  { %170 = dma.done.wait [#allocation4], 256  }
  0x32   :  { %171 = vsyncadd [#allocation4], 4294967040 }
  0x33   :  { %106 = vsyncpa [#allocation3], 1 }
  0x34   :  { %107 = vsyncpa [#allocation4], 1 }

</bundles_post_ra>
